<compile_context>
chip_gen: v7x
topology: tpu7x:2x2x1
jax: 0.10.0
libtpu: 0.0.40
codegen_flags: <defaults>
</compile_context>

<pallas_src>
import functools

import jax
import jax.numpy as jnp
from jax.experimental import pallas as pl
from jax.experimental.pallas import tpu as pltpu


def _fold_partial(v, fold_rows, fold_cols):
    """Reduce a (tb, tl) f32 tile to (fold_rows, fold_cols) using only VPU adds.

    fold_cols divides tl and fold_rows divides tb by construction (they are
    128 / 8 when the tile is a multiple, otherwise the full tile extent).
    Slices are vreg-aligned (multiples of 8 sublanes / 128 lanes)."""
    tb, tl = v.shape
    if fold_cols < tl:
        p = v[:, 0:fold_cols]
        for g in range(1, tl // fold_cols):
            p = p + v[:, g * fold_cols:(g + 1) * fold_cols]
    else:
        p = v
    if fold_rows < tb:
        s = p[0:fold_rows, :]
        for g in range(1, tb // fold_rows):
            s = s + p[g * fold_rows:(g + 1) * fold_rows, :]
    else:
        s = p
    return s


def _block_loss(x_ref, y_ref, m_ref, *, margin, pad_ind, n_rows, n_cols,
                mask_rows, mask_cols):
    """Elementwise squared hinge loss for one (tb, tl) tile, in f32."""
    x = x_ref[...].astype(jnp.float32)          # upcast in-kernel (no HBM copy)
    y = y_ref[...].astype(jnp.float32)
    z = jnp.maximum(jnp.float32(margin) - (2.0 * y - 1.0) * x, 0.0)
    loss = z * z

    # Optional boolean user mask, streamed as int8 (1 byte/elem).
    if m_ref is not None:
        loss = loss * m_ref[...].astype(jnp.float32)

    tb, tl = loss.shape
    keep = None
    if mask_rows:
        row = (pl.program_id(0) * tb
               + jax.lax.broadcasted_iota(jnp.int32, (tb, tl), 0))
        keep = row < n_rows
    if mask_cols or (pad_ind is not None):
        col = (pl.program_id(1) * tl
               + jax.lax.broadcasted_iota(jnp.int32, (tb, tl), 1))
        if mask_cols:
            ck = col < n_cols
            keep = ck if keep is None else (keep & ck)
        if pad_ind is not None:
            pk = col != pad_ind
            keep = pk if keep is None else (keep & pk)
    if keep is not None:
        # Select (not multiply) so garbage in padded edge blocks cannot leak.
        loss = jnp.where(keep, loss, 0.0)
    return loss


def _elem_kernel(*refs, margin, pad_ind, n_rows, n_cols, has_mask):
    if has_mask:
        x_ref, y_ref, m_ref, o_ref = refs
    else:
        x_ref, y_ref, o_ref = refs
        m_ref = None
    o_ref[...] = _block_loss(x_ref, y_ref, m_ref, margin=margin,
                             pad_ind=pad_ind, n_rows=n_rows, n_cols=n_cols,
                             mask_rows=False, mask_cols=False)


def _reduce_kernel(*refs, margin, pad_ind, n_rows, n_cols, mask_rows,
                   mask_cols, has_mask, fold_rows, fold_cols):
    if has_mask:
        x_ref, y_ref, m_ref, o_ref, acc_ref = refs
    else:
        x_ref, y_ref, o_ref, acc_ref = refs
        m_ref = None

    @pl.when(pl.program_id(1) == 0)
    def _():
        acc_ref[...] = jnp.zeros_like(acc_ref)

    loss = _block_loss(x_ref, y_ref, m_ref, margin=margin, pad_ind=pad_ind,
                       n_rows=n_rows, n_cols=n_cols,
                       mask_rows=mask_rows, mask_cols=mask_cols)
    # Vectorized partial accumulation (VPU only) into a small resident scratch.
    acc_ref[...] += _fold_partial(loss, fold_rows, fold_cols)

    @pl.when(pl.program_id(1) == pl.num_programs(1) - 1)
    def _():
        o_ref[...] = acc_ref[...]


def squared_hinge_loss(inputs, target, mask=None, *, margin=1.0,
                       reduction='mean', pad_ind=None,
                       block_rows=256, block_cols=1024):
    """Pallas implementation of deepxml SquaredHingeLoss.forward."""
    assert reduction in ('none', 'mean', 'sum')
    B, L = inputs.shape
    assert target.shape == (B, L)
    assert block_rows % 8 == 0 and block_cols % 128 == 0

    if pad_ind is not None:
        pad_ind = int(pad_ind)
        if pad_ind < 0:
            pad_ind += L

    # Clamp tile to the array (clamped dims equal the full extent -> legal).
    tb = block_rows if B > block_rows else B
    tl = block_cols if L > block_cols else L
    nb = pl.cdiv(B, tb)
    nl = pl.cdiv(L, tl)
    ragged_rows = (B % tb) != 0
    ragged_cols = (L % tl) != 0

    has_mask = mask is not None
    args = [inputs, target]
    in_specs = [pl.BlockSpec((tb, tl), lambda i, j: (i, j)),
                pl.BlockSpec((tb, tl), lambda i, j: (i, j))]
    if has_mask:
        assert mask.shape == (B, L)
        args.append(mask.astype(jnp.int8))       # 1 byte/elem mask stream
        in_specs.append(pl.BlockSpec((tb, tl), lambda i, j: (i, j)))

    in_bytes = sum(int(a.size) * a.dtype.itemsize for a in args)
    flops = 5 * B * L

    if reduction == 'none':
        kernel = functools.partial(
            _elem_kernel, margin=float(margin), pad_ind=pad_ind,
            n_rows=B, n_cols=L, has_mask=has_mask)
        out_bytes = B * L * 4
        return pl.pallas_call(
            kernel,
            out_shape=jax.ShapeDtypeStruct((B, L), jnp.float32),
            grid_spec=pltpu.PrefetchScalarGridSpec(
                num_scalar_prefetch=0,
                grid=(nb, nl),
                in_specs=in_specs,
                out_specs=pl.BlockSpec((tb, tl), lambda i, j: (i, j)),
            ),
            compiler_params=pltpu.CompilerParams(
                dimension_semantics=("parallel", "parallel")),
            cost_estimate=pl.CostEstimate(
                flops=flops, transcendentals=0,
                bytes_accessed=in_bytes + out_bytes),
        )(*args)

    # 'sum' / 'mean': lane-dense per-batch-block partial sums, batch axis
    # parallel (both v7x TensorCores), L axis is the (arbitrary) reduction.
    fold_rows = 8 if tb % 8 == 0 else tb
    fold_cols = 128 if tl % 128 == 0 else tl
    kernel = functools.partial(
        _reduce_kernel, margin=float(margin), pad_ind=pad_ind,
        n_rows=B, n_cols=L, mask_rows=ragged_rows, mask_cols=ragged_cols,
        has_mask=has_mask, fold_rows=fold_rows, fold_cols=fold_cols)
    out_bytes = nb * fold_rows * fold_cols * 4
    partials = pl.pallas_call(
        kernel,
        out_shape=jax.ShapeDtypeStruct((nb * fold_rows, fold_cols),
                                       jnp.float32),
        grid_spec=pltpu.PrefetchScalarGridSpec(
            num_scalar_prefetch=0,
            grid=(nb, nl),
            in_specs=in_specs,
            out_specs=pl.BlockSpec((fold_rows, fold_cols),
                                   lambda i, j: (i, 0)),
            scratch_shapes=[pltpu.VMEM((fold_rows, fold_cols), jnp.float32)],
        ),
        compiler_params=pltpu.CompilerParams(
            dimension_semantics=("parallel", "arbitrary")),
        cost_estimate=pl.CostEstimate(
            flops=flops + B * L, transcendentals=0,
            bytes_accessed=in_bytes + out_bytes),
    )(*args)

    total = jnp.sum(partials)                    # tiny finish in the wrapper
    if reduction == 'mean':
        return total / jnp.float32(B * L)
    return total


def _reference(inputs, target, mask=None, *, margin=1.0, reduction='mean',
               pad_ind=None):
    loss = jnp.maximum(margin - (2.0 * target - 1.0) * inputs, 0.0) ** 2
    if pad_ind is not None:
        loss = loss.at[:, pad_ind].set(0.0)
    if mask is not None:
        loss = jnp.where(mask, loss, 0.0)
    if reduction == 'none':
        return loss
    if reduction == 'mean':
        return loss.mean()
    return loss.sum()


if __name__ == "__main__":
    key = jax.random.PRNGKey(0)
    k1, k2, k3, k4 = jax.random.split(key, 4)

    # Case 1: default config (mean, no mask, no pad_ind), single tile.
    B1, L1 = 16, 384
    x1 = jax.random.normal(k1, (B1, L1), dtype=jnp.float32)
    y1 = (jax.random.uniform(k2, (B1, L1)) > 0.9).astype(jnp.float32)
    out = jax.block_until_ready(squared_hinge_loss(x1, y1))
    ref = _reference(x1, y1)
    assert jnp.allclose(out, ref, rtol=1e-5, atol=1e-5)

    # Case 2: sum + mask + pad_ind, multi-block ragged grid on both axes
    # (tests bounds masking and the partial-sum reduction path).
    B2, L2 = 20, 640
    x2 = jax.random.normal(k3, (B2, L2), dtype=jnp.float32)
    y2 = (jax.random.uniform(k4, (B2, L2)) > 0.8).astype(jnp.float32)
    m2 = jax.random.uniform(k1, (B2, L2)) > 0.2
    out = jax.block_until_ready(
        squared_hinge_loss(x2, y2, m2, margin=1.0, reduction='sum',
                           pad_ind=3, block_rows=8, block_cols=256))
    ref = _reference(x2, y2, m2, margin=1.0, reduction='sum', pad_ind=3)
    assert jnp.allclose(out, ref, rtol=1e-5, atol=1e-2)

    # Case 3: reduction='none' elementwise path with mask + pad_ind (ragged).
    out = jax.block_until_ready(
        squared_hinge_loss(x2, y2, m2, reduction='none', pad_ind=3,
                           block_rows=8, block_cols=256))
    ref = _reference(x2, y2, m2, reduction='none', pad_ind=3)
    assert jnp.allclose(out, ref, rtol=1e-5, atol=1e-5)

    # Case 4: bf16 logits streamed natively (upcast happens in-kernel).
    xb = x1.astype(jnp.bfloat16)
    out = jax.block_until_ready(squared_hinge_loss(xb, y1, reduction='mean'))
    ref = _reference(xb.astype(jnp.float32), y1, reduction='mean')
    assert jnp.allclose(out, ref, rtol=1e-5, atol=1e-5)

    print("KERNEL_OK")
</pallas_src>

<mosaic_0001>
module attributes {stable_mosaic.version = 11 : i64} {
  func.func @_reduce_kernel(%arg0: i32, %arg1: i32, %arg2: memref<16x384xf32, #tpu.memory_space<vmem>>, %arg3: memref<16x384xf32, #tpu.memory_space<vmem>>, %arg4: memref<8x128xf32, #tpu.memory_space<vmem>>, %arg5: memref<8x128xf32, #tpu.memory_space<vmem>>) attributes {dimension_semantics = [#tpu.dimension_semantics<parallel>, #tpu.dimension_semantics<arbitrary>], iteration_bounds = array<i64: 1, 1>, scalar_prefetch = 0 : i64, scratch_operands = 1 : i64, tpu.core_type = #tpu.core_type<tc>, window_params = [{transform_indices = @transform_0, window_bounds = array<i64: 16, 384>}, {transform_indices = @transform_1, window_bounds = array<i64: 16, 384>}, {transform_indices = @transform_2, window_bounds = array<i64: 8, 128>}]} {
    %c0_i32 = arith.constant 0 : i32
    %0 = arith.cmpi eq, %arg1, %c0_i32 : i32
    %1 = arith.extui %0 : i1 to i32
    %c0_i32_0 = arith.constant 0 : i32
    %2 = arith.cmpi ne, %1, %c0_i32_0 : i32
    scf.if %2 {
      %cst_13 = arith.constant 0.000000e+00 : f32
      %29 = vector.broadcast %cst_13 : f32 to vector<8x128xf32>
      %c0_14 = arith.constant 0 : index
      %c0_15 = arith.constant 0 : index
      %30 = vector.load %arg5[%c0_14, %c0_15] : memref<8x128xf32, #tpu.memory_space<vmem>>, vector<8x128xf32>
      tpu.vector_store %arg5[%c0_14, %c0_15], %29 {strides = array<i32>} : memref<8x128xf32, #tpu.memory_space<vmem>>, vector<8x128xf32>,
    } else {
    }
    %c0 = arith.constant 0 : index
    %c0_1 = arith.constant 0 : index
    %3 = vector.load %arg2[%c0, %c0_1] : memref<16x384xf32, #tpu.memory_space<vmem>>, vector<16x384xf32>
    %c0_2 = arith.constant 0 : index
    %c0_3 = arith.constant 0 : index
    %4 = vector.load %arg3[%c0_2, %c0_3] : memref<16x384xf32, #tpu.memory_space<vmem>>, vector<16x384xf32>
    %cst = arith.constant 2.000000e+00 : f32
    %5 = vector.broadcast %cst : f32 to vector<16x384xf32>
    %6 = arith.mulf %5, %4 : vector<16x384xf32>
    %cst_4 = arith.constant 1.000000e+00 : f32
    %7 = vector.broadcast %cst_4 : f32 to vector<16x384xf32>
    %8 = arith.subf %6, %7 : vector<16x384xf32>
    %9 = arith.mulf %8, %3 : vector<16x384xf32>
    %cst_5 = arith.constant 1.000000e+00 : f32
    %10 = vector.broadcast %cst_5 : f32 to vector<16x384xf32>
    %11 = arith.subf %10, %9 : vector<16x384xf32>
    %cst_6 = arith.constant 0.000000e+00 : f32
    %12 = vector.broadcast %cst_6 : f32 to vector<16x384xf32>
    %13 = arith.maximumf %11, %12 : vector<16x384xf32>
    %14 = arith.mulf %13, %13 : vector<16x384xf32>
    %c0_7 = arith.constant 0 : index
    %c0_8 = arith.constant 0 : index
    %15 = vector.load %arg5[%c0_7, %c0_8] : memref<8x128xf32, #tpu.memory_space<vmem>>, vector<8x128xf32>
    %16 = vector.extract_strided_slice %14 {offsets = [0, 0], sizes = [16, 128], strides = [1, 1]} : vector<16x384xf32> to vector<16x128xf32>
    %17 = vector.extract_strided_slice %14 {offsets = [0, 128], sizes = [16, 128], strides = [1, 1]} : vector<16x384xf32> to vector<16x128xf32>
    %18 = arith.addf %16, %17 : vector<16x128xf32>
    %19 = vector.extract_strided_slice %14 {offsets = [0, 256], sizes = [16, 128], strides = [1, 1]} : vector<16x384xf32> to vector<16x128xf32>
    %20 = arith.addf %18, %19 : vector<16x128xf32>
    %21 = vector.extract_strided_slice %20 {offsets = [0, 0], sizes = [8, 128], strides = [1, 1]} : vector<16x128xf32> to vector<8x128xf32>
    %22 = vector.extract_strided_slice %20 {offsets = [8, 0], sizes = [8, 128], strides = [1, 1]} : vector<16x128xf32> to vector<8x128xf32>
    %23 = arith.addf %21, %22 : vector<8x128xf32>
    %24 = arith.addf %15, %23 : vector<8x128xf32>
    %c0_9 = arith.constant 0 : index
    %c0_10 = arith.constant 0 : index
    %25 = vector.load %arg5[%c0_9, %c0_10] : memref<8x128xf32, #tpu.memory_space<vmem>>, vector<8x128xf32>
    tpu.vector_store %arg5[%c0_9, %c0_10], %24 {strides = array<i32>} : memref<8x128xf32, #tpu.memory_space<vmem>>, vector<8x128xf32>,
    %c0_i32_11 = arith.constant 0 : i32
    %26 = arith.cmpi eq, %arg1, %c0_i32_11 : i32
    %27 = arith.extui %26 : i1 to i32
    %c0_i32_12 = arith.constant 0 : i32
    %28 = arith.cmpi ne, %27, %c0_i32_12 : i32
    scf.if %28 {
      %c0_13 = arith.constant 0 : index
      %c0_14 = arith.constant 0 : index
      %29 = vector.load %arg5[%c0_13, %c0_14] : memref<8x128xf32, #tpu.memory_space<vmem>>, vector<8x128xf32>
      %c0_15 = arith.constant 0 : index
      %c0_16 = arith.constant 0 : index
      %30 = vector.load %arg4[%c0_15, %c0_16] : memref<8x128xf32, #tpu.memory_space<vmem>>, vector<8x128xf32>
      tpu.vector_store %arg4[%c0_15, %c0_16], %29 {strides = array<i32>} : memref<8x128xf32, #tpu.memory_space<vmem>>, vector<8x128xf32>,
    } else {
    }
    return
  }
  func.func @transform_0(%arg0: i32, %arg1: i32) -> (i32, i32) {
    %c0_i32 = arith.constant 0 : i32
    return %arg0, %arg1 : i32, i32
  }
  func.func @transform_1(%arg0: i32, %arg1: i32) -> (i32, i32) {
    %c0_i32 = arith.constant 0 : i32
    return %arg0, %arg1 : i32, i32
  }
  func.func @transform_2(%arg0: i32, %arg1: i32) -> (i32, i32) {
    %c0_i32 = arith.constant 0 : i32
    %c0_i32_0 = arith.constant 0 : i32
    return %arg0, %c0_i32 : i32, i32
  }
}

</mosaic_0001>

<bundles_post_ra>
// kernel: tpu_custom_call.1
= control target key start
LH: loop header
LB: loop body
LE: loop exit
PB: predicated region body
PF: predicated region fallthrough
CT: control target
= control target key end

     0   :  { %7 = vsyncpa [#allocation4], 0  ;;  %s261_s0 = inlined_call_operand.hbm [shape: f32[16,384], index: 0, kind: input, shape index: {}]   ;;  %s262_s1 = inlined_call_operand.hbm [shape: f32[16,384], index: 1, kind: input, shape index: {}]   ;;  %s263_s2 = inlined_call_operand.hbm [shape: f32[8,128], index: 2, kind: output, shape index: {}]  }
   0x1   :  { %8 = vsyncpa [#allocation7], 0 }
   0x2   :  { %9 = vsyncpa [#allocation5], 0  ;;  %s205_s9 = smov [#allocation3]   ;;  %s133_s13 = scalar_lea.hbm %s261_s0, 768 }
   0x3   :  { %s15_s10 = sshll.u32 %s205_s9, 4  ;;  %p134_p0 = scmp.ne.s32.totalorder %s261_s0, %s133_s13  ;;  %s16_s10 = int_to_ptr.vmem [resolvable:$true] %s15_s10 }
   0x4   :  { %p137_p1 = scmp.lt.u32.totalorder %s133_s13, %s261_s0 }
   0x6   :  { %p139_p2 = pnand %p137_p1, %p134_p0 }
   0x8   :  { %142 = shalt.err (!%p139_p2)
}
   0x9   :  { %s143_s18 = scalar_lea.vmem %s16_s10, 768  ;;  %p148_p4 = scmp.lt.s32.totalorder %s16_s10, %s16_s10 }
   0xa   :  { %p144_p3 = scmp.ne.s32.totalorder %s16_s10, %s143_s18  ;;  %p149_p5 = scmp.lt.s32.totalorder %s143_s18, %s143_s18 }
   0xc   :  { %p150_p6 = por %p149_p5, %p148_p4 }
   0xe   :  { %p151_p7 = pnand %p150_p6, %p144_p3 }
  0x10   :  { %154 = shalt.err (!%p151_p7)
}
  0x11   :  { %s206_s19 = smov 384   ;;  %s207_s20 = smov 24  }
  0x12   :  { %21 = dma.hbm_to_vmem [thread:$0]  %s261_s0, 768, %s16_s10, [#allocation4], %s206_s19, %s206_s19, %s207_s20  }
  0x13   :  { %s208_s23 = smov [#allocation6]   ;;  %s155_s27 = scalar_lea.hbm %s262_s1, 768 }
  0x14   :  { %s27_s24 = sshll.u32 %s208_s23, 4  ;;  %p156_p8 = scmp.ne.s32.totalorder %s262_s1, %s155_s27  ;;  %s28_s24 = int_to_ptr.vmem [resolvable:$true] %s27_s24 }
  0x15   :  { %p159_p9 = scmp.lt.u32.totalorder %s155_s27, %s262_s1 }
  0x17   :  { %p161_p10 = pnand %p159_p9, %p156_p8 }
  0x19   :  { %164 = shalt.err (!%p161_p10)
}
  0x1a   :  { %s165_s4 = scalar_lea.vmem %s28_s24, 768  ;;  %p170_p12 = scmp.lt.s32.totalorder %s28_s24, %s28_s24 }
  0x1b   :  { %p166_p11 = scmp.ne.s32.totalorder %s28_s24, %s165_s4  ;;  %p171_p13 = scmp.lt.s32.totalorder %s165_s4, %s165_s4 }
  0x1d   :  { %p172_p0 = por %p171_p13, %p170_p12 }
  0x1f   :  { %p173_p1 = pnand %p172_p0, %p166_p11 }
  0x21   :  { %176 = shalt.err (!%p173_p1)
}
  0x22   :  { %33 = dma.hbm_to_vmem [thread:$0]  %s262_s1, 768, %s28_s24, [#allocation7], %s206_s19, %s206_s19, %s207_s20  }
  0x23   :  { %199 = dma.done.wait [#allocation4], 768  }
  0x24   :  { %200 = vsyncadd [#allocation4], 4294966528 }
  0x25   :  { %201 = dma.done.wait [#allocation7], 768  }
  0x26   :  { %202 = vsyncadd [#allocation7], 4294966528  ;;  %v51_v0 = vld [vmem:[#allocation6] sm:$0xff]  ;;  %v52_v1 = vld [vmem:[#allocation6 + $0x8] sm:$0xff]  ;;  %s209_s1 = smov [#allocation8]  }
  0x27   :  { %v53_v2 = vld [vmem:[#allocation6 + $0x10] sm:$0xff]  ;;  %v54_v3 = vld [vmem:[#allocation6 + $0x18] sm:$0xff]  ;;  %v55_v4 = vld [vmem:[#allocation6 + $0x20] sm:$0xff]  ;;  %v57_v6 = vmul.f32 2.0, %v51_v0  ;;  %v58_v7 = vmul.f32 2.0, %v52_v1  ;;  %s112_s6 = sshll.u32 %s209_s1, 4  ;;  %s113_s6 = int_to_ptr.vmem [resolvable:$true] %s112_s6 }
  0x28   :  { %v56_v5 = vld [vmem:[#allocation6 + $0x28] sm:$0xff]  ;;  %v59_v8 = vmul.f32 2.0, %v53_v2  ;;  %v45_v9 = vld [vmem:[#allocation3] sm:$0xff]  ;;  %v46_v10 = vld [vmem:[#allocation3 + $0x8] sm:$0xff]  ;;  %v60_v12 = vmul.f32 2.0, %v54_v3  ;;  %v61_v13 = vmul.f32 2.0, %v55_v4  ;;  %p182_p3 = scmp.lt.s32.totalorder %s113_s6, %s113_s6 }
  0x29   :  { %v47_v11 = vld [vmem:[#allocation3 + $0x10] sm:$0xff]  ;;  %v62_v14 = vmul.f32 2.0, %v56_v5  ;;  %v48_v15 = vld [vmem:[#allocation3 + $0x18] sm:$0xff]  ;;  %v49_v16 = vld [vmem:[#allocation3 + $0x20] sm:$0xff]  ;;  %v122_v18 = vadd.f32 -1.0, %v57_v6  ;;  %v123_v19 = vadd.f32 -1.0, %v58_v7 }
  0x2a   :  { %v50_v17 = vld [vmem:[#allocation3 + $0x28] sm:$0xff]  ;;  %v124_v20 = vadd.f32 -1.0, %v59_v8  ;;  %v125_v21 = vadd.f32 -1.0, %v60_v12  ;;  %v126_v22 = vadd.f32 -1.0, %v61_v13  ;;  %s177_s7 = scalar_lea.vmem %s113_s6, 128 }
  0x2b   :  { %v127_v23 = vadd.f32 -1.0, %v62_v14  ;;  %v69_v24 = vmul.f32 %v122_v18, %v45_v9  ;;  %v70_v25 = vmul.f32 %v123_v19, %v46_v10  ;;  %p178_p2 = scmp.ne.s32.totalorder %s113_s6, %s177_s7  ;;  %p183_p4 = scmp.lt.s32.totalorder %s177_s7, %s177_s7 }
  0x2c   :  { %v71_v26 = vmul.f32 %v124_v20, %v47_v11  ;;  %v72_v27 = vmul.f32 %v125_v21, %v48_v15  ;;  %v73_v28 = vmul.f32 %v126_v22, %v49_v16 }
  0x2d   :  { %v74_v29 = vmul.f32 %v127_v23, %v50_v17  ;;  %v75_v30 = vsub.f32 1.0, %v69_v24  ;;  %v76_v31 = vsub.f32 1.0, %v70_v25  ;;  %p184_p5 = por %p183_p4, %p182_p3 }
  0x2e   :  { %v77_v32 = vsub.f32 1.0, %v71_v26  ;;  %v78_v33 = vsub.f32 1.0, %v72_v27  ;;  %v79_v34 = vsub.f32 1.0, %v73_v28 }
  0x2f   :  { %v80_v35 = vsub.f32 1.0, %v74_v29  ;;  %v81_v36 = vmax.f32 %v75_v30, 0.0  ;;  %v82_v37 = vmax.f32 %v76_v31, 0.0  ;;  %p185_p6 = pnand %p184_p5, %p178_p2 }
  0x30   :  { %v83_v38 = vmax.f32 %v77_v32, 0.0  ;;  %v84_v39 = vmax.f32 %v78_v33, 0.0  ;;  %v85_v40 = vmax.f32 %v79_v34, 0.0 }
  0x31   :  { %v86_v41 = vmax.f32 %v80_v35, 0.0  ;;  %v87_v42 = vmul.f32 %v81_v36, %v81_v36  ;;  %v88_v43 = vmul.f32 %v82_v37, %v82_v37 }
  0x32   :  { %v89_v44 = vmul.f32 %v83_v38, %v83_v38  ;;  %v90_v45 = vmul.f32 %v84_v39, %v84_v39  ;;  %v91_v46 = vmul.f32 %v85_v40, %v85_v40 }
  0x33   :  { %v92_v47 = vmul.f32 %v86_v41, %v86_v41  ;;  %v94_v48 = vadd.f32 %v88_v43, %v87_v42 }
  0x34   :  { %v95_v49 = vadd.f32 %v91_v46, %v90_v45 }
  0x35   :  { %v96_v50 = vadd.f32 %v94_v48, %v89_v44 }
  0x36   :  { %v97_v51 = vadd.f32 %v95_v49, %v92_v47 }
  0x38   :  { %v98_v52 = vadd.f32 %v97_v51, %v96_v50 }
  0x3a   :  { %105 = vst [vmem:[#allocation8] sm:$0xff] %v98_v52 }
  0x3b   :  { %188 = shalt.err (!%p185_p6)
}
  0x3c   :  { %s189_s10 = scalar_lea.hbm %s263_s2, 128 }
  0x3d   :  { %p190_p7 = scmp.ne.s32.totalorder %s263_s2, %s189_s10  ;;  %p193_p8 = scmp.lt.u32.totalorder %s189_s10, %s263_s2 }
  0x3f   :  { %p195_p9 = pnand %p193_p8, %p190_p7 }
  0x41   :  { %198 = shalt.err (!%p195_p9)
}
  0x42   :  { %115 = dma.vmem_to_hbm [thread:$0]  %s113_s6, 128, %s263_s2, [#allocation5]  }
  0x43   :  { %203 = dma.done.wait [#allocation5], 128  }
  0x44   :  { %204 = vsyncadd [#allocation5], 4294967168 }
  0x45   :  { %119 = vsyncpa [#allocation4], 1 }
  0x46   :  { %120 = vsyncpa [#allocation7], 1 }
  0x47   :  { %121 = vsyncpa [#allocation5], 1 }

</bundles_post_ra>
